<compile_context>
chip_gen: v5e
topology: v5e:2x2
jax: 0.10.0
libtpu: 0.0.40
codegen_flags: <defaults>
</compile_context>

<pallas_src>
import math

import jax
import jax.numpy as jnp
from jax import lax
from jax.experimental import pallas as pl
from jax.experimental.pallas import tpu as pltpu


# ---------------------------------------------------------------------------
# Kernel 1: KG aggregation  (scatter-mean as K-tiled on-the-fly one-hot matmul)
#   grid = (entity_tiles, edge_k_tiles)   — edge axis is the reduction
# ---------------------------------------------------------------------------
def _make_entity_agg_kernel(te, tke):
    def entity_agg_kernel(head_ref, neigh_ref, invc_ref, out_ref, acc_ref):
        k = pl.program_id(1)

        @pl.when(k == 0)
        def _():
            acc_ref[...] = jnp.zeros_like(acc_ref)

        # Build the one_hot(head) tile on the fly from the int32 head indices:
        # row r of this tile is entity id (i*te + r).  Padded edges carry
        # head == -1 and therefore never match (contribute zero).
        i = pl.program_id(0)
        row_ids = i * te + lax.broadcasted_iota(jnp.int32, (te, tke), 0)
        oh = (row_ids == head_ref[...]).astype(jnp.bfloat16)        # [te, tke]

        # scatter-sum contribution of this edge K-tile:
        #   [te, tke](bf16) @ [tke, C](bf16) -> f32
        acc_ref[...] += jnp.dot(oh, neigh_ref[...],
                                preferred_element_type=jnp.float32)

        @pl.when(k == pl.num_programs(1) - 1)
        def _():
            # scatter_mean: divide by per-head count (clamped to 1 for empty rows)
            out_ref[...] = acc_ref[...] * invc_ref[...]

    return entity_agg_kernel


# ---------------------------------------------------------------------------
# Kernel 2: user aggregation
#   grid = (user_tiles, entity_k_tiles)   — entity axis is the reduction
#   The score softmax + (score @ disen_w) epilogue runs once per user tile
#   (only on the last K step), not per K step.
# ---------------------------------------------------------------------------
def user_agg_kernel(u_ref, latT_ref, im_ref, ent_ref, dw_ref, out_ref, acc_ref):
    k = pl.program_id(1)

    @pl.when(k == 0)
    def _():
        acc_ref[...] = jnp.zeros_like(acc_ref)

    # user_agg0 partial: [tu, tkn](bf16) @ [tkn, C](bf16) -> f32
    acc_ref[...] += jnp.dot(im_ref[...], ent_ref[...],
                            preferred_element_type=jnp.float32)

    @pl.when(k == pl.num_programs(1) - 1)
    def _():
        # score = softmax(user_emb @ latent_emb.T, axis=1)   (latT pre-transposed)
        s = jnp.dot(u_ref[...], latT_ref[...], preferred_element_type=jnp.float32)
        s = s - jnp.max(s, axis=1, keepdims=True)
        e = jnp.exp(s)
        score = e * pl.reciprocal(jnp.sum(e, axis=1, keepdims=True), approx=True)

        ua = acc_ref[...]
        out_ref[...] = (jnp.dot(score, dw_ref[...],
                                preferred_element_type=jnp.float32) * ua + ua)


# ---------------------------------------------------------------------------
# Wrapper
# ---------------------------------------------------------------------------
def _ceil_to(x, m):
    return ((x + m - 1) // m) * m


def aggregator_forward(entity_emb, user_emb, latent_emb, relation_emb,
                       edge_index, edge_type, interact_mat, disen_weight_att):
    n_entities, channel = entity_emb.shape
    n_users = user_emb.shape[0]
    n_edges = edge_index.shape[1]

    head = edge_index[0].astype(jnp.int32)
    tail = edge_index[1]

    # ----- tile sizes (multiples of 8 sublanes / 128 lanes), adaptive to shape -----
    te = min(256, _ceil_to(n_entities, 8))        # entity output row tile
    tkn = min(2048, _ceil_to(n_entities, 128))    # entity K-tile (user matmul)
    n_ent_pad = _ceil_to(n_entities, math.lcm(te, tkn))
    tu = min(256, _ceil_to(n_users, 8))           # user output row tile
    n_users_pad = _ceil_to(n_users, tu)
    tke = min(2048, _ceil_to(n_edges, 128))       # edge K-tile (entity matmul)
    n_edges_pad = _ceil_to(n_edges, tke)

    # ----- grid-invariant precompute (hoisted out of the kernels) -----
    # neighbor messages (gather + multiply fuse in XLA); padded edges -> 0
    neigh = (entity_emb[tail] * relation_emb[edge_type]).astype(jnp.bfloat16)
    neigh = jnp.pad(neigh, ((0, n_edges_pad - n_edges), (0, 0)))           # [E_pad, C]

    # head indices, padded with -1 (never matches a valid entity row)
    head_pad = jnp.pad(head, (0, n_edges_pad - n_edges),
                       constant_values=-1)[None, :]                        # [1, E_pad]

    # per-head counts via O(E) segment_sum (not an O(N*E) dense reduction)
    counts = jax.ops.segment_sum(jnp.ones((n_edges,), jnp.float32), head,
                                 num_segments=n_ent_pad)
    inv_counts = (1.0 / jnp.maximum(counts, 1.0))[:, None]                 # [N_pad, 1]

    # disen_weight = softmax(disen_weight_att, -1) @ relation_emb  (tiny, hoisted)
    dw = jax.nn.softmax(disen_weight_att, axis=-1) @ relation_emb          # [F, C] f32
    latT = latent_emb.T                                                    # [C, F] f32

    entity_emb_bf = jnp.pad(entity_emb.astype(jnp.bfloat16),
                            ((0, n_ent_pad - n_entities), (0, 0)))
    interact_bf = jnp.pad(interact_mat.astype(jnp.bfloat16),
                          ((0, n_users_pad - n_users),
                           (0, n_ent_pad - n_entities)))
    user_emb_p = jnp.pad(user_emb, ((0, n_users_pad - n_users), (0, 0)))

    vmem_cap = 32 * 1024 * 1024  # tiles sized for < ~8 MiB live; safe on v5e/v6e/v7x

    # ---- entity aggregation kernel: grid over (entity tiles, edge K-tiles) ----
    entity_agg = pl.pallas_call(
        _make_entity_agg_kernel(te, tke),
        out_shape=jax.ShapeDtypeStruct((n_ent_pad, channel), jnp.float32),
        grid=(n_ent_pad // te, n_edges_pad // tke),
        in_specs=[
            pl.BlockSpec((1, tke), lambda i, k: (0, k)),         # head idx K-tile (i32)
            pl.BlockSpec((tke, channel), lambda i, k: (k, 0)),   # neigh K-tile    (bf16)
            pl.BlockSpec((te, 1), lambda i, k: (i, 0)),          # 1/count
        ],
        out_specs=pl.BlockSpec((te, channel), lambda i, k: (i, 0)),
        scratch_shapes=[pltpu.VMEM((te, channel), jnp.float32)],
        compiler_params=pltpu.CompilerParams(
            dimension_semantics=("parallel", "arbitrary"),
            vmem_limit_bytes=vmem_cap),
    )(head_pad, neigh, inv_counts)[:n_entities]

    # ---- user aggregation kernel: grid over (user tiles, entity K-tiles) ----
    user_agg = pl.pallas_call(
        user_agg_kernel,
        out_shape=jax.ShapeDtypeStruct((n_users_pad, channel), jnp.float32),
        grid=(n_users_pad // tu, n_ent_pad // tkn),
        in_specs=[
            pl.BlockSpec((tu, channel), lambda i, k: (i, 0)),            # user_emb tile (f32)
            pl.BlockSpec(latT.shape, lambda i, k: (0, 0)),               # latent_emb.T  (f32)
            pl.BlockSpec((tu, tkn), lambda i, k: (i, k)),                # interact tile (bf16)
            pl.BlockSpec((tkn, channel), lambda i, k: (k, 0)),           # entity K-tile (bf16)
            pl.BlockSpec(dw.shape, lambda i, k: (0, 0)),                 # disen_weight  (f32)
        ],
        out_specs=pl.BlockSpec((tu, channel), lambda i, k: (i, 0)),
        scratch_shapes=[pltpu.VMEM((tu, channel), jnp.float32)],
        compiler_params=pltpu.CompilerParams(
            dimension_semantics=("parallel", "arbitrary"),
            vmem_limit_bytes=vmem_cap),
    )(user_emb_p, latT, interact_bf, entity_emb_bf, dw)[:n_users]

    return entity_agg, user_agg


# ---------------------------------------------------------------------------
# Plain-JAX reference (sanity check of the kernel semantics)
# ---------------------------------------------------------------------------
def aggregator_reference(entity_emb, user_emb, latent_emb, relation_emb,
                         edge_index, edge_type, interact_mat, disen_weight_att):
    n_entities = entity_emb.shape[0]
    head, tail = edge_index[0], edge_index[1]
    neigh = entity_emb[tail] * relation_emb[edge_type]
    sums = jax.ops.segment_sum(neigh, head, num_segments=n_entities)
    cnts = jax.ops.segment_sum(jnp.ones((head.shape[0],), jnp.float32), head,
                               num_segments=n_entities)
    entity_agg = sums / jnp.maximum(cnts, 1.0)[:, None]

    score = jax.nn.softmax(user_emb @ latent_emb.T, axis=1)
    user_agg = interact_mat @ entity_emb
    disen_w = jax.nn.softmax(disen_weight_att, axis=-1) @ relation_emb
    user_agg = (score @ disen_w) * user_agg + user_agg
    return entity_agg, user_agg


if __name__ == "__main__":
    key = jax.random.PRNGKey(0)
    n_entities, n_users, n_relations, n_factors = 64, 32, 8, 8
    n_edges, channel = 128, 128

    ks = jax.random.split(key, 8)
    entity_emb = jax.random.normal(ks[0], (n_entities, channel), jnp.float32)
    user_emb = jax.random.normal(ks[1], (n_users, channel), jnp.float32)
    latent_emb = jax.random.normal(ks[2], (n_factors, channel), jnp.float32)
    relation_emb = jax.random.normal(ks[3], (n_relations, channel), jnp.float32)
    head = jax.random.randint(ks[4], (n_edges,), 0, n_entities, jnp.int32)
    tail = jax.random.randint(ks[5], (n_edges,), 0, n_entities, jnp.int32)
    edge_index = jnp.stack([head, tail], axis=0)                    # [2, n_edges]
    edge_type = jax.random.randint(ks[6], (n_edges,), 0, n_relations, jnp.int32)
    # interact_mat is sparse in torch; use a dense synthetic user-entity matrix here.
    interact_mat = (jax.random.uniform(ks[7], (n_users, n_entities)) < 0.1
                    ).astype(jnp.float32)
    disen_weight_att = jax.random.normal(key, (n_factors, n_relations), jnp.float32)

    ent_agg, usr_agg = aggregator_forward(
        entity_emb, user_emb, latent_emb, relation_emb,
        edge_index, edge_type, interact_mat, disen_weight_att)
    jax.block_until_ready((ent_agg, usr_agg))

    ent_ref, usr_ref = aggregator_reference(
        entity_emb, user_emb, latent_emb, relation_emb,
        edge_index, edge_type, interact_mat, disen_weight_att)

    # Tolerance loosened vs. the pure-f32 version because embedding operands of
    # the two large matmuls are cast to bf16 (one_hot / interact_mat stay exact).
    assert jnp.allclose(ent_agg, ent_ref, rtol=3e-2, atol=3e-2)
    assert jnp.allclose(usr_agg, usr_ref, rtol=3e-2, atol=3e-2)
    print("KERNEL_OK")
</pallas_src>

<mosaic_0001>
module attributes {stable_mosaic.version = 11 : i64} {
  func.func @entity_agg_kernel(%arg0: i32, %arg1: i32, %arg2: memref<1x128xi32, #tpu.memory_space<vmem>>, %arg3: memref<128x128xbf16, #tpu.memory_space<vmem>>, %arg4: memref<64x1xf32, #tpu.memory_space<vmem>>, %arg5: memref<64x128xf32, #tpu.memory_space<vmem>>, %arg6: memref<64x128xf32, #tpu.memory_space<vmem>>) attributes {dimension_semantics = [#tpu.dimension_semantics<parallel>, #tpu.dimension_semantics<arbitrary>], iteration_bounds = array<i64: 2, 1>, scalar_prefetch = 0 : i64, scratch_operands = 1 : i64, tpu.core_type = #tpu.core_type<tc>, window_params = [{transform_indices = @transform_0, window_bounds = array<i64: 1, 128>}, {transform_indices = @transform_1, window_bounds = array<i64: 128, 128>}, {transform_indices = @transform_2, window_bounds = array<i64: 64, 1>}, {transform_indices = @transform_3, window_bounds = array<i64: 64, 128>}]} {
    %c0_i32 = arith.constant 0 : i32
    %0 = arith.cmpi eq, %arg1, %c0_i32 : i32
    %1 = arith.extui %0 : i1 to i32
    %c0_i32_0 = arith.constant 0 : i32
    %2 = arith.cmpi ne, %1, %c0_i32_0 : i32
    scf.if %2 {
      %cst_10 = arith.constant 0.000000e+00 : f32
      %21 = vector.broadcast %cst_10 : f32 to vector<64x128xf32>
      %c0_11 = arith.constant 0 : index
      %c0_12 = arith.constant 0 : index
      %22 = vector.load %arg6[%c0_11, %c0_12] : memref<64x128xf32, #tpu.memory_space<vmem>>, vector<64x128xf32>
      tpu.vector_store %arg6[%c0_11, %c0_12], %21 {strides = array<i32>} : memref<64x128xf32, #tpu.memory_space<vmem>>, vector<64x128xf32>,
    } else {
    }
    %c64_i32 = arith.constant 64 : i32
    %3 = arith.muli %arg0, %c64_i32 : i32
    %4 = tpu.iota {dimensions = array<i32: 0>} : vector<64x128xi32>
    %5 = vector.broadcast %3 : i32 to vector<64x128xi32>
    %6 = arith.addi %5, %4 : vector<64x128xi32>
    %c0 = arith.constant 0 : index
    %c0_1 = arith.constant 0 : index
    %7 = vector.load %arg2[%c0, %c0_1] : memref<1x128xi32, #tpu.memory_space<vmem>>, vector<1x128xi32>
    %8 = vector.broadcast %7 : vector<1x128xi32> to vector<64x128xi32>
    %9 = arith.cmpi eq, %6, %8 : vector<64x128xi32>
    %10 = arith.extui %9 : vector<64x128xi1> to vector<64x128xi32>
    %11 = arith.sitofp %10 : vector<64x128xi32> to vector<64x128xf32>
    %12 = arith.truncf %11 : vector<64x128xf32> to vector<64x128xbf16>
    %c0_2 = arith.constant 0 : index
    %c0_3 = arith.constant 0 : index
    %13 = vector.load %arg6[%c0_2, %c0_3] : memref<64x128xf32, #tpu.memory_space<vmem>>, vector<64x128xf32>
    %c0_4 = arith.constant 0 : index
    %c0_5 = arith.constant 0 : index
    %14 = vector.load %arg3[%c0_4, %c0_5] : memref<128x128xbf16, #tpu.memory_space<vmem>>, vector<128x128xbf16>
    %cst = arith.constant dense<0.000000e+00> : vector<64x128xf32>
    %15 = tpu.matmul %12, %14, %cst {dimension_numbers = #tpu.dot_dimension_numbers<[1], [0], [0], [1], [0, 0, 1, 1], [], []>} : vector<64x128xbf16>, vector<128x128xbf16>, vector<64x128xf32> -> vector<64x128xf32>
    %16 = arith.addf %13, %15 : vector<64x128xf32>
    %c0_6 = arith.constant 0 : index
    %c0_7 = arith.constant 0 : index
    %17 = vector.load %arg6[%c0_6, %c0_7] : memref<64x128xf32, #tpu.memory_space<vmem>>, vector<64x128xf32>
    tpu.vector_store %arg6[%c0_6, %c0_7], %16 {strides = array<i32>} : memref<64x128xf32, #tpu.memory_space<vmem>>, vector<64x128xf32>,
    %c0_i32_8 = arith.constant 0 : i32
    %18 = arith.cmpi eq, %arg1, %c0_i32_8 : i32
    %19 = arith.extui %18 : i1 to i32
    %c0_i32_9 = arith.constant 0 : i32
    %20 = arith.cmpi ne, %19, %c0_i32_9 : i32
    scf.if %20 {
      %c0_10 = arith.constant 0 : index
      %c0_11 = arith.constant 0 : index
      %21 = vector.load %arg6[%c0_10, %c0_11] : memref<64x128xf32, #tpu.memory_space<vmem>>, vector<64x128xf32>
      %c0_12 = arith.constant 0 : index
      %c0_13 = arith.constant 0 : index
      %22 = vector.load %arg4[%c0_12, %c0_13] : memref<64x1xf32, #tpu.memory_space<vmem>>, vector<64x1xf32>
      %23 = vector.broadcast %22 : vector<64x1xf32> to vector<64x128xf32>
      %24 = arith.mulf %21, %23 : vector<64x128xf32>
      %c0_14 = arith.constant 0 : index
      %c0_15 = arith.constant 0 : index
      %25 = vector.load %arg5[%c0_14, %c0_15] : memref<64x128xf32, #tpu.memory_space<vmem>>, vector<64x128xf32>
      tpu.vector_store %arg5[%c0_14, %c0_15], %24 {strides = array<i32>} : memref<64x128xf32, #tpu.memory_space<vmem>>, vector<64x128xf32>,
    } else {
    }
    return
  }
  func.func @transform_0(%arg0: i32, %arg1: i32) -> (i32, i32) {
    %c0_i32 = arith.constant 0 : i32
    %c0_i32_0 = arith.constant 0 : i32
    return %c0_i32, %arg1 : i32, i32
  }
  func.func @transform_1(%arg0: i32, %arg1: i32) -> (i32, i32) {
    %c0_i32 = arith.constant 0 : i32
    %c0_i32_0 = arith.constant 0 : i32
    return %arg1, %c0_i32 : i32, i32
  }
  func.func @transform_2(%arg0: i32, %arg1: i32) -> (i32, i32) {
    %c0_i32 = arith.constant 0 : i32
    %c0_i32_0 = arith.constant 0 : i32
    return %arg0, %c0_i32 : i32, i32
  }
  func.func @transform_3(%arg0: i32, %arg1: i32) -> (i32, i32) {
    %c0_i32 = arith.constant 0 : i32
    %c0_i32_0 = arith.constant 0 : i32
    return %arg0, %c0_i32 : i32, i32
  }
}

</mosaic_0001>

<bundles_post_ra>
// kernel: tpu_custom_call.1
= control target key start
LH: loop header
LB: loop body
LE: loop exit
PB: predicated region body
PF: predicated region fallthrough
CT: control target
= control target key end

     0   :  { %8 = vsyncpa [#allocation4], 0  ;;  %s991_s0 = inlined_call_operand.vmem [shape: s32[1,128], index: 0, kind: input, shape index: {}]   ;;  %s992_s1 = inlined_call_operand.vmem [shape: bf16[128,128], index: 1, kind: input, shape index: {}]   ;;  %s993_s2 = inlined_call_operand.vmem [shape: f32[128,1], index: 2, kind: input, shape index: {}]   ;;  %s994_s3 = inlined_call_operand.hbm [shape: f32[128,128], index: 3, kind: output, shape index: {}]  }
   0x1   :  { %10 = vsyncpa [#allocation4 + $0x1], 0  ;;  %s850_s12 = smov 0   ;;  %s852_s13 = smov 0  }
   0x2   :  { %s854_s14 = smov 0   ;;  %s856_s15 = smov 0  }
   0x3   :  { %s858_s16 = smov 0   ;;  %s860_s17 = smov 0  }
   0x4 LB: > { %s586_s18 = sadd.s32 4294967295, %s824_s17   ;;  %s587_s19 = sadd.s32 4294967294, %s824_s17   ;;  %s824_s17 = sphi %s860_s17, %s16_s17   ;;  %s820_s16 = sphi %s858_s16, %s1001_s16   ;;  %s816_s15 = sphi %s856_s15, %s1000_s15   ;;  %s812_s14 = sphi %s854_s14, %s999_s14   ;;  %s808_s13 = sphi %s852_s13, %s998_s13   ;;  %s804_s12 = sphi %s850_s12, %s997_s12  }
   0x5   : > { %s28_s20 = sadd.s32 1, %s820_s16  ;;  %s113_s21 = sadd.s32 1, %s812_s14 }
   0x6   : > { %p30_p0 = scmp.ge.s32.totalorder %s28_s20, 2  ;;  %p123_p1 = scmp.ne.s32.totalorder %s812_s14, %s808_s13 }
   0x7   : > { %p124_p2 = scmp.eq.s32.totalorder %s586_s18, 1  ;;  %p129_p3 = scmp.ne.s32.totalorder %s808_s13, %s804_s12 }
   0x8   : > { %s1003_s20 = smov (%p30_p0, %s28_s20), 0  ;;  %p130_p5 = scmp.eq.s32.totalorder %s587_s19, 1 }
   0x9   : > { %p890_p4 = por %p124_p2, %p123_p1  ;;  %s110_s23 = ssub.s32 %s820_s16, %s1003_s20 }
   0xa   : > { %p592_p6 = scmp.ge.s32.totalorder %s824_s17, 1  ;;  %p111_p7 = scmp.eq.s32.totalorder %s110_s23, 0 }
   0xb   : > { %p897_p8 = por %p130_p5, %p129_p3  ;;  %p172_p9 = scmp.lt.s32.totalorder %s824_s17, 3 }
   0xc   : > { %s903_s25 = scalar_select %p111_p7, %s812_s14, %s113_s21  }
   0xd   : > { %p173_p10 = pnand %p592_p6, %p172_p9 }
   0xe   : > { %s594_s28 = sshll.u32 (!%p173_p10), %s816_s15, 3  ;;  %s596_s21 = sshll.u32 (!%p173_p10), %s816_s15, 6 }
   0xf   : > { %176 = sbr.rel (%p173_p10) target bundleno = 201 (0xc9), region = 32  ;;  %p214_p11 = scmp.lt.s32.totalorder (!%p173_p10), %s594_s28, 15 }
  0x10   : > { %s201_s6 = sand.u32 (!%p173_p10), 1, %s808_s13   ;;  %s485_s11 = scalar_lea.hbm (!%p173_p10), %s994_s3, %s596_s21 }
  0x11   : > { %s593_s7 = sshll.u32 (!%p173_p10), %s201_s6, 6  ;;  %s488_s18 = sshll.u32 (!%p173_p10), %s485_s11, 4  ;;  %s489_s18 = int_to_ptr.hbm [resolvable:$true] %s488_s18 }
  0x12   : > { %s203_s8 = scalar_lea.vmem (!%p173_p10), [#allocation3], %s593_s7  ;;  %s474_s15 = scalar_lea.sflag (!%p173_p10), [#allocation4], %s201_s6 }
  0x13   : > { %s486_s19 = sshll.u32 (!%p173_p10), %s203_s8, 4  ;;  %s487_s19 = int_to_ptr.vmem [resolvable:$true] %s486_s19 }
  0x14   : > { %v657_v0 = vld [vmem:[%s992_s1 + $0x38] sm:$0xff]  ;;  %v826_v1 = vmov 0   ;;  %v656_v2 = vld [vmem:[%s992_s1 + $0x30] sm:$0xff]  ;;  %s1005_s28 = smov (!%p214_p11, %s594_s28), 15  ;;  %v655_v3 = vld [vmem:[%s992_s1 + $0x28] sm:$0xff]  ;;  %v233_v6 = vlaneseq  ;;  %v242_v16 = vstv %s596_s21  ;;  %s760_s21 = sshra.s32 %s489_s18, 4  ;;  %s761_s21 = int_to_ptr.hbm [resolvable:$true] %s760_s21 }
  0x15   : > { %743 = vset.pattern.permute.xlu1 %v826_v1  ;;  %742 = vset.pattern.permute.xlu0 %v826_v1  ;;  %s595_s4 = sshll.u32 %s1005_s28, 3  ;;  %v654_v8 = vld [vmem:[%s992_s1 + $0x20] sm:$0xff]  ;;  %v653_v12 = vld [vmem:[%s992_s1 + $0x18] sm:$0xff]  ;;  %v652_v15 = vld [vmem:[%s992_s1 + $0x10] sm:$0xff]  ;;  %v827_v36 = vmov 1.0|1.0   ;;  %p767_p1 = scmp.lt.s32.totalorder %s761_s21, %s994_s3 }
  0x16   : > { %353 = vmatpush.bf16.msra.mxu0 %v657_v0  ;;  %659 = vmatpush.bf16.msra.mxu1 %v657_v0  ;;  %s918_s9 = scalar_lea.vmem %s993_s2, %s595_s4  ;;  %v234_v9 = vshrl.u32 %v233_v6, 7  ;;  %v745_v25 = vld [vmem:[%s991_s0] ss:$0 sm:$0xff]  ;;  %v651_v28 = vld [vmem:[%s992_s1 + $0x8] sm:$0xff]  ;;  %s762_s23 = scalar_lea.hbm %s761_s21, 64 }
  0x17   : > { %660 = vmatpush.bf16.msra.mxu2 %v657_v0  ;;  %661 = vmatpush.bf16.msra.mxu3 %v657_v0  ;;  %v411_v4 = vld [vmem:[%s918_s9 + $0x10] sm:$0xff]  ;;  %v409_v5 = vld [vmem:[%s918_s9] sm:$0xff]  ;;  %v412_v10 = vld [vmem:[%s918_s9 + $0x18] sm:$0xff]  ;;  %p763_p12 = scmp.ne.s32.totalorder %s761_s21, %s762_s23  ;;  %s766_s28 = scalar_lea.hbm %s994_s3, 128 }
  0x18   : > { %744 = vset.pattern.permute.xlu2 %v826_v1  ;;  %429 = vperm.xlu1 %743, %v411_v4   ;;  %v413_v7 = vld [vmem:[%s918_s9 + $0x20] sm:$0xff]  ;;  %v410_v11 = vld [vmem:[%s918_s9 + $0x8] sm:$0xff]  ;;  %v235_v13 = vadd.s32 8, %v234_v9  ;;  %v236_v17 = vadd.s32 16, %v234_v9  ;;  %v237_v18 = vadd.s32 24, %v234_v9  ;;  %v238_v19 = vadd.s32 32, %v234_v9  ;;  %p768_p2 = scmp.lt.s32.totalorder %s766_s28, %s762_s23 }
  0x19   : > { %419 = vperm.xlu0 %742, %v409_v5   ;;  %439 = vperm.xlu2 %744, %v413_v7   ;;  %v414_v14 = vld [vmem:[%s918_s9 + $0x28] sm:$0xff]  ;;  %v239_v20 = vadd.s32 40, %v234_v9  ;;  %v240_v21 = vadd.s32 48, %v234_v9  ;;  %v241_v22 = vadd.s32 56, %v234_v9  ;;  %v243_v23 = vadd.s32 %v242_v16, %v234_v9  ;;  %v416_v26 = vld [vmem:[%s918_s9 + $0x38] sm:$0xff]  ;;  %v415_v27 = vld [vmem:[%s918_s9 + $0x30] sm:$0xff]  ;;  %p764_p13 = pnand %p763_p12, %p890_p4 }
  0x1a   : > { %354 = vmatpush.bf16.msra.mxu0 %v656_v2  ;;  %662 = vmatpush.bf16.msra.mxu1 %v656_v2  ;;  %v244_v24 = vadd.s32 %v242_v16, %v235_v13  ;;  %v245_v29 = vadd.s32 %v242_v16, %v236_v17  ;;  %v246_v30 = vadd.s32 %v242_v16, %v237_v18  ;;  %v650_v35 = vld [vmem:[%s992_s1] sm:$0xff]  ;;  %p769_p3 = por %p768_p2, %p767_p1 }
  0x1b   : > { %663 = vmatpush.bf16.msra.mxu2 %v656_v2  ;;  %664 = vmatpush.bf16.msra.mxu3 %v656_v2  ;;  %v247_v31 = vadd.s32 %v242_v16, %v238_v19  ;;  %v248_v32 = vadd.s32 %v242_v16, %v239_v20  ;;  %v249_v33 = vadd.s32 %v242_v16, %v240_v21  ;;  %p765_p0 = pneg %p764_p13 }
  0x1c   : > { %v250_v34 = vadd.s32 %v242_v16, %v241_v22  ;;  %vm253_vm0 = vcmp.eq.s32.totalorder %v243_v23, %v745_v25  ;;  %vm254_vm1 = vcmp.eq.s32.totalorder %v244_v24, %v745_v25  ;;  %vm255_vm2 = vcmp.eq.s32.totalorder %v245_v29, %v745_v25 }
  0x1d   : > { %vm256_vm3 = vcmp.eq.s32.totalorder %v246_v30, %v745_v25  ;;  %vm257_vm4 = vcmp.eq.s32.totalorder %v247_v31, %v745_v25  ;;  %vm258_vm5 = vcmp.eq.s32.totalorder %v248_v32, %v745_v25  ;;  %vm637_vm6 = vmpackc.low %vm254_vm1, %vm253_vm0  ;;  %vm259_vm7 = vcmp.eq.s32.totalorder %v249_v33, %v745_v25  ;;  %p770_p5 = pnand %p769_p3, %p765_p0 }
  0x1e   : > { %355 = vmatpush.bf16.msra.mxu0 %v655_v3  ;;  %665 = vmatpush.bf16.msra.mxu1 %v655_v3  ;;  %vm260_vm8 = vcmp.eq.s32.totalorder %v250_v34, %v745_v25  ;;  %vm639_vm9 = vmpackc.low %vm256_vm3, %vm255_vm2 }
  0x1f   : > { %666 = vmatpush.bf16.msra.mxu2 %v655_v3  ;;  %667 = vmatpush.bf16.msra.mxu3 %v655_v3  ;;  %vm641_vm10 = vmpackc.low %vm258_vm5, %vm257_vm4 }
  0x20   : > { %434 = vperm.xlu1 %743, %v412_v10   ;;  %vm643_vm11 = vmpackc.low %vm260_vm8, %vm259_vm7 }
  0x21   : > { %424 = vperm.xlu0 %742, %v410_v11   ;;  %444 = vperm.xlu2 %744, %v414_v14  }
  0x22   : > { %356 = vmatpush.bf16.msra.mxu0 %v654_v8  ;;  %668 = vmatpush.bf16.msra.mxu1 %v654_v8 }
  0x23   : > { %669 = vmatpush.bf16.msra.mxu2 %v654_v8  ;;  %670 = vmatpush.bf16.msra.mxu3 %v654_v8 }
  0x26   : > { %357 = vmatpush.bf16.msra.mxu0 %v653_v12  ;;  %671 = vmatpush.bf16.msra.mxu1 %v653_v12 }
  0x27   : > { %672 = vmatpush.bf16.msra.mxu2 %v653_v12  ;;  %673 = vmatpush.bf16.msra.mxu3 %v653_v12 }
  0x28   : > { %454 = vperm.xlu1 %743, %v416_v26  }
  0x29   : > { %449 = vperm.xlu0 %742, %v415_v27  }
  0x2a   : > { %358 = vmatpush.bf16.msra.mxu0 %v652_v15  ;;  %674 = vmatpush.bf16.msra.mxu1 %v652_v15 }
  0x2b   : > { %675 = vmatpush.bf16.msra.mxu2 %v652_v15  ;;  %676 = vmatpush.bf16.msra.mxu3 %v652_v15 }
  0x2e   : > { %359 = vmatpush.bf16.msra.mxu0 %v651_v28  ;;  %677 = vmatpush.bf16.msra.mxu1 %v651_v28 }
  0x2f   : > { %678 = vmatpush.bf16.msra.mxu2 %v651_v28  ;;  %679 = vmatpush.bf16.msra.mxu3 %v651_v28 }
  0x32   : > { %360 = vmatpush.bf16.msra.mxu0 %v650_v35  ;;  %680 = vmatpush.bf16.msra.mxu1 %v650_v35 }
  0x33   : > { %681 = vmatpush.bf16.msra.mxu2 %v650_v35  ;;  %682 = vmatpush.bf16.msra.mxu3 %v650_v35 }
  0x35   : > { %638 = vmatmul.msk.bf16.vlgmr.msra.gmra.mxu0 %vm637_vm6, %v827_v36  ;;  %640 = vmatmul.msk.bf16.vlgmr.msra.gmra.mxu1 %vm639_vm9, %v827_v36 }
  0x36   : > { %642 = vmatmul.msk.bf16.vlgmr.msra.gmra.mxu2 %vm641_vm10, %v827_v36  ;;  %644 = vmatmul.msk.bf16.vlgmr.msra.gmra.mxu3 %vm643_vm11, %v827_v36 }
  0x73   : > { %v440_v45 = vpop.permute.xlu2 %439 }
  0x7b   : > { %v445_v56 = vpop.permute.xlu2 %444 }
  0x8a   : > { %v430_v38 = vpop.permute.xlu1 %429 }
  0x8b   : > { %v420_v37 = vpop.permute.xlu0 %419 }
  0x92   : > { %v435_v44 = vpop.permute.xlu1 %434 }
  0x93   : > { %v425_v39 = vpop.permute.xlu0 %424 }
  0x9a   : > { %v455_v55 = vpop.permute.xlu1 %454 }
  0x9b   : > { %v450_v46 = vpop.permute.xlu0 %449 }
  0xb2   : > { %v362_v40 = vpop.f32.mrf.mxu0  ;;  %v367_v41 = vpop.f32.mrf.mxu1 }
  0xb3   : > { %v457_v42 = vmul.f32 %v420_v37, %v362_v40  ;;  %v459_v43 = vmul.f32 %v430_v38, %v367_v41 }
  0xb5   : > { %465 = vst [vmem:[%s203_s8] sm:$0xff] %v457_v42 }
  0xb6   : > { %467 = vst [vmem:[%s203_s8 + $0x10] sm:$0xff] %v459_v43 }
  0xb9   : > { %v372_v47 = vpop.f32.mrf.mxu2  ;;  %v377_v48 = vpop.f32.mrf.mxu3 }
  0xba   : > { %v461_v49 = vmul.f32 %v440_v45, %v372_v47  ;;  %v463_v50 = vmul.f32 %v450_v46, %v377_v48  ;;  %v364_v51 = vpop.f32.mrf.mxu0  ;;  %v369_v52 = vpop.f32.mrf.mxu1 }
  0xbb   : > { %v458_v53 = vmul.f32 %v425_v39, %v364_v51  ;;  %v460_v54 = vmul.f32 %v435_v44, %v369_v52 }
  0xbc   : > { %469 = vst [vmem:[%s203_s8 + $0x20] sm:$0xff] %v461_v49 }
  0xbd   : > { %471 = vst [vmem:[%s203_s8 + $0x30] sm:$0xff] %v463_v50 }
  0xbe   : > { %466 = vst [vmem:[%s203_s8 + $0x8] sm:$0xff] %v458_v53 }
  0xbf   : > { %468 = vst [vmem:[%s203_s8 + $0x18] sm:$0xff] %v460_v54 }
  0xc1   : > { %v374_v57 = vpop.f32.mrf.mxu2  ;;  %v379_v58 = vpop.f32.mrf.mxu3 }
  0xc2   : > { %v462_v59 = vmul.f32 %v445_v56, %v374_v57  ;;  %v464_v60 = vmul.f32 %v455_v55, %v379_v58 }
  0xc4   : > { %470 = vst [vmem:[%s203_s8 + $0x28] sm:$0xff] %v462_v59 }
  0xc5   : > { %472 = vst [vmem:[%s203_s8 + $0x38] sm:$0xff] %v464_v60 }
  0xc6   : > { %773 = shalt.err (!%p770_p5)
}
  0xc7   : > { %s828_s4 = smov 128   ;;  %s829_s5 = smov 8  }
  0xc8   : > { %683 = dma.vmem_to_hbm [thread:$0]  (%p890_p4), %s487_s19, 1024, %s489_s18, %s474_s15, %s828_s4, %s828_s4, %s829_s5  }
  0xc9 PF: > { %p689_p6 = scmp.ge.s32.totalorder %s824_s17, 2  ;;  %s503_s6 = sand.u32 1, %s804_s12  }
  0xca   : > { %s504_s7 = scalar_lea.sflag [#allocation4], %s503_s6 }
  0xcb   : > { %p686_p7 = pnand %p689_p6, %p897_p8 }
  0xcd   : > { %p687_p9 = pneg %p686_p7 }
  0xcf   : > { %799 = dma.done.wait (%p687_p9), %s504_s7, 1024  }
  0xd0   : > { %801 = vsyncadd (%p687_p9), %s504_s7, 4294966272  ;;  %s16_s17 = sadd.s32 1, %s824_s17   ;;  %s997_s12 = smov %s808_s13 }
  0xd1   : > { %p13_p10 = scmp.ge.s32.totalorder %s16_s17, 4   ;;  %s998_s13 = smov %s812_s14 }
  0xd2   : > { %s999_s14 = smov %s903_s25  ;;  %s1000_s15 = smov %s820_s16 }
  0xd3   : > { %s1001_s16 = smov %s1003_s20  ;;  %15 = sbr.rel (!%p13_p10) target bundleno = 4 (0x4), region = 81 }
  0xd8   :  { %510 = vsyncpa [#allocation4], 1 }
  0xd9   :  { %512 = vsyncpa [#allocation4 + $0x1], 1 }

</bundles_post_ra>
